<compile_context>
chip_gen: v5e
topology: v5e:2x2
jax: 0.10.0
libtpu: 0.0.40
codegen_flags: <defaults>
</compile_context>

<pallas_src>
import functools
import math

import numpy as np
import jax
import jax.numpy as jnp
from jax.experimental import pallas as pl
from jax.experimental.pallas import tpu as pltpu


_K_PAD = 128  # concatenated temporal-table rows, padded to one full MXU contraction


def _feat_sizes(freq):
    # column order in x_mark: 0=month(13), 1=day(32), 2=weekday(7), 3=hour(24), 4=minute(4)
    return (13, 32, 7, 24, 4) if freq == "t" else (13, 32, 7, 24)


@functools.lru_cache(maxsize=None)
def _temporal_table_np(d_model, freq):
    """Concatenated FixedEmbedding tables [K_PAD, d_model] + per-feature row offsets."""
    assert d_model % 2 == 0, "FixedEmbedding requires an even d_model"
    sizes = _feat_sizes(freq)
    assert sum(sizes) <= _K_PAD
    tbl = np.zeros((_K_PAD, d_model), np.float32)
    offsets = []
    off = 0
    for c in sizes:
        offsets.append(off)
        pos = np.arange(c, dtype=np.float32)[:, None]
        div = np.exp(np.arange(0, d_model, 2, dtype=np.float32) * -(math.log(10000.0) / d_model))
        tbl[off:off + c, 0::2] = np.sin(pos * div)
        tbl[off:off + c, 1::2] = np.cos(pos * div)
        off += c
    return tbl, tuple(offsets)


def _round_up(x, m):
    return (x + m - 1) // m * m


def _pick_block_b(B, L, c_in, nmark, d_model, block_b, budget_bytes=10 * 1024 * 1024):
    """Largest divisor of B that (a) keeps >=2 grid steps when B>=2 (v7x dual-TC),
    (b) keeps the double-buffered per-step tile footprint under a conservative budget."""
    l8 = _round_up(max(L, 1), 8)
    lane = lambda n: _round_up(max(n, 1), 128)

    def est(bb):  # double-buffered x/mark/out tiles (lane-padded in VMEM)
        return 2 * bb * l8 * (lane(c_in) + lane(nmark) + lane(d_model)) * 4

    cap = max(1, min(block_b, B))
    if B >= 2:
        cap = max(1, min(cap, B // 2))
    while cap > 1 and est(cap) > budget_bytes:
        cap -= 1
    bb = 1
    for d in range(1, cap + 1):
        if B % d == 0:
            bb = d
    return bb


def _data_embed_kernel(x_ref, mark_ref, tbl_ref, w_ref, out_ref, *, nf, offsets):
    # x_ref:    (bb, L, c_in)    float   raw values
    # mark_ref: (bb, L, >=nf)    float   integer-valued time-feature codes
    # tbl_ref:  (128, D)         f32     concatenated FixedEmbedding tables (zero-padded)
    # w_ref:    (3*c_in, D)      f32     flattened circular Conv1d weight [tap -1 | 0 | +1]
    # out_ref:  (bb, L, D)
    bb, L, _ = x_ref.shape
    kdim = tbl_ref.shape[0]

    tbl = tbl_ref[...]
    w = w_ref[...]
    classes = jax.lax.broadcasted_iota(jnp.int32, (L, kdim), 1)

    for b in range(bb):  # static, small unroll (bb <= block_b)
        # --- TemporalEmbedding: boolean multi-hot (disjoint row ranges -> OR == sum) --
        codes = mark_ref[b].astype(jnp.int32)             # x.long() equivalent, in-kernel
        mh = classes == (codes[:, 0:1] + offsets[0])
        for f in range(1, nf):
            mh = mh | (classes == (codes[:, f:f + 1] + offsets[f]))
        acc = jnp.dot(mh.astype(jnp.float32), tbl, preferred_element_type=jnp.float32)

        # --- TokenEmbedding: circular Conv1d(k=3, no bias) as one matmul --------------
        xb = x_ref[b].astype(jnp.float32)                                 # (L, c_in)
        xm1 = jnp.concatenate([xb[L - 1:L, :], xb[:L - 1, :]], axis=0)    # x_{l-1} (circular)
        xp1 = jnp.concatenate([xb[1:, :], xb[0:1, :]], axis=0)            # x_{l+1} (circular)
        xcat = jnp.concatenate([xm1, xb, xp1], axis=1)                    # (L, 3*c_in)
        acc = acc + jnp.dot(xcat, w, preferred_element_type=jnp.float32)

        out_ref[b] = acc.astype(out_ref.dtype)


@functools.partial(jax.jit, static_argnames=("d_model", "freq", "block_b", "out_dtype"))
def data_embedding_wo_pos(x, x_mark, conv_weight, *, d_model, freq="h", block_b=8,
                          out_dtype=None):
    """Forward of DataEmbedding_wo_pos (embed_type='fixed'), dropout in eval mode.

    x:           [B, L, c_in]     float values
    x_mark:      [B, L, >=nf]     integer time-feature codes (month, day, weekday, hour[, minute])
    conv_weight: [d_model, c_in, 3]  TokenEmbedding Conv1d weight (no bias)
    """
    B, L, c_in = x.shape
    sizes = _feat_sizes(freq)
    nf = len(sizes)
    assert x_mark.shape[0] == B and x_mark.shape[1] == L and x_mark.shape[2] >= nf
    nmark = x_mark.shape[2]
    out_dt = x.dtype if out_dtype is None else jnp.dtype(out_dtype)

    tbl_np, offsets = _temporal_table_np(d_model, freq)
    table = jnp.asarray(tbl_np)                                          # [128, D] constant
    # Circular Conv1d(k=3) flattened so rows are ordered [tap for x_{l-1} | x_l | x_{l+1}].
    wcat = conv_weight.astype(jnp.float32).transpose(2, 1, 0).reshape(3 * c_in, d_model)

    bb = _pick_block_b(B, L, c_in, nmark, d_model, block_b)
    grid = (B // bb,)

    kernel = functools.partial(_data_embed_kernel, nf=nf, offsets=offsets)

    out = pl.pallas_call(
        kernel,
        out_shape=jax.ShapeDtypeStruct((B, L, d_model), out_dt),
        grid=grid,
        in_specs=[
            pl.BlockSpec((bb, L, c_in), lambda i: (i, 0, 0)),
            pl.BlockSpec((bb, L, nmark), lambda i: (i, 0, 0)),
            pl.BlockSpec((_K_PAD, d_model), lambda i: (0, 0)),      # resident across steps
            pl.BlockSpec((3 * c_in, d_model), lambda i: (0, 0)),    # resident across steps
        ],
        out_specs=pl.BlockSpec((bb, L, d_model), lambda i: (i, 0, 0)),
        compiler_params=pltpu.CompilerParams(dimension_semantics=("parallel",)),
    )(x, x_mark, table, wcat)

    return out


# ---------------------------------------------------------------------------
# Pure-JAX reference mirroring the PyTorch forward (independent table build).
# ---------------------------------------------------------------------------
def _fixed_embedding_table(c_in, d_model):
    pos = jnp.arange(c_in, dtype=jnp.float32)[:, None]
    div = jnp.exp(jnp.arange(0, d_model, 2, dtype=jnp.float32) * -(math.log(10000.0) / d_model))
    w = jnp.zeros((c_in, d_model), jnp.float32)
    w = w.at[:, 0::2].set(jnp.sin(pos * div))
    w = w.at[:, 1::2].set(jnp.cos(pos * div))
    return w


def _reference(x, x_mark, conv_weight, d_model, freq):
    sizes = _feat_sizes(freq)
    xi = x_mark.astype(jnp.int32)
    temp = jnp.zeros((*x.shape[:2], d_model), jnp.float32)
    for f, c in enumerate(sizes):
        temp = temp + jnp.take(_fixed_embedding_table(c, d_model), xi[..., f], axis=0)
    # TokenEmbedding: circular padding of 1 on each side, then VALID conv, kernel=3, no bias.
    xt = x.astype(jnp.float32).transpose(0, 2, 1)                       # [B, C, L]
    xpad = jnp.concatenate([xt[:, :, -1:], xt, xt[:, :, :1]], axis=-1)  # [B, C, L+2]
    val = jax.lax.conv_general_dilated(
        xpad, conv_weight.astype(jnp.float32), window_strides=(1,), padding="VALID",
        dimension_numbers=("NCH", "OIH", "NCH"),
        precision=jax.lax.Precision.HIGHEST,
    ).transpose(0, 2, 1)                                                # [B, L, D]
    return val + temp


def _rand_marks(key, B, L):
    ks = jax.random.split(key, 5)
    cols = [jax.random.randint(ks[i], (B, L), 0, m) for i, m in enumerate([13, 32, 7, 24, 4])]
    return jnp.stack(cols, axis=-1).astype(jnp.float32)


if __name__ == "__main__":
    B, L, C_IN, D = 2, 8, 7, 32
    key = jax.random.PRNGKey(0)
    kx, kw, km, kx2, km2, kx3, km3 = jax.random.split(key, 7)

    x = jax.random.normal(kx, (B, L, C_IN), jnp.float32)
    # Kaiming-normal-like (fan_in, leaky_relu) Conv1d weight [D, C_IN, 3].
    fan_in = C_IN * 3
    gain = math.sqrt(2.0 / (1.0 + 0.01 ** 2))
    conv_w = (gain / math.sqrt(fan_in)) * jax.random.normal(kw, (D, C_IN, 3), jnp.float32)
    x_mark = _rand_marks(km, B, L)

    # freq='t' (5 features) and freq='h' (4 features, module default); bb=1, grid=2 steps.
    for freq in ("t", "h"):
        out = jax.block_until_ready(data_embedding_wo_pos(x, x_mark, conv_w, d_model=D, freq=freq))
        ref = _reference(x, x_mark, conv_w, D, freq)
        assert out.shape == (B, L, D)
        assert jnp.allclose(out, ref, atol=1e-4, rtol=1e-4), f"mismatch vs reference (freq={freq})"

    # Odd L (50, not a multiple of 8) exercises non-aligned in-kernel slices/concats.
    B2, L2 = 3, 50
    x2 = jax.random.normal(kx2, (B2, L2, C_IN), jnp.float32)
    x_mark2 = _rand_marks(km2, B2, L2)
    out2 = jax.block_until_ready(data_embedding_wo_pos(x2, x_mark2, conv_w, d_model=D, freq="h"))
    ref2 = _reference(x2, x_mark2, conv_w, D, "h")
    assert out2.shape == (B2, L2, D)
    assert jnp.allclose(out2, ref2, atol=1e-4, rtol=1e-4), "mismatch vs reference (odd L)"

    # Batch block > 1 (in-kernel unrolled loop) with a 2-step grid.
    B3, L3 = 4, 24
    x3 = jax.random.normal(kx3, (B3, L3, C_IN), jnp.float32)
    x_mark3 = _rand_marks(km3, B3, L3)
    out3 = jax.block_until_ready(
        data_embedding_wo_pos(x3, x_mark3, conv_w, d_model=D, freq="t", block_b=2))
    ref3 = _reference(x3, x_mark3, conv_w, D, "t")
    assert out3.shape == (B3, L3, D)
    assert jnp.allclose(out3, ref3, atol=1e-4, rtol=1e-4), "mismatch vs reference (bb=2)"

    # bf16 output path (f32 accumulation, halved store stream) — looser tolerance.
    out_bf = jax.block_until_ready(
        data_embedding_wo_pos(x, x_mark, conv_w, d_model=D, freq="h", out_dtype=jnp.bfloat16))
    ref_bf = _reference(x, x_mark, conv_w, D, "h")
    assert out_bf.dtype == jnp.bfloat16
    assert jnp.allclose(out_bf.astype(jnp.float32), ref_bf, atol=6e-2, rtol=6e-2), \
        "mismatch vs reference (bf16 output)"

    print("KERNEL_OK")
</pallas_src>

<mosaic_0001>
module attributes {stable_mosaic.version = 11 : i64} {
  func.func @_data_embed_kernel(%arg0: i32, %arg1: memref<1x8x7xf32, #tpu.memory_space<vmem>>, %arg2: memref<1x8x5xf32, #tpu.memory_space<vmem>>, %arg3: memref<128x32xf32, #tpu.memory_space<vmem>>, %arg4: memref<21x32xf32, #tpu.memory_space<vmem>>, %arg5: memref<1x8x32xf32, #tpu.memory_space<vmem>>) attributes {dimension_semantics = [#tpu.dimension_semantics<parallel>], iteration_bounds = array<i64: 2>, scalar_prefetch = 0 : i64, scratch_operands = 0 : i64, tpu.core_type = #tpu.core_type<tc>, window_params = [{transform_indices = @transform_0, window_bounds = array<i64: 1, 8, 7>}, {transform_indices = @transform_1, window_bounds = array<i64: 1, 8, 5>}, {pipeline_mode = #tpu.pipeline_mode<synchronous>, transform_indices = @transform_2, window_bounds = array<i64: 128, 32>}, {pipeline_mode = #tpu.pipeline_mode<synchronous>, transform_indices = @transform_3, window_bounds = array<i64: 21, 32>}, {transform_indices = @transform_4, window_bounds = array<i64: 1, 8, 32>}]} {
    %c0 = arith.constant 0 : index
    %c0_0 = arith.constant 0 : index
    %0 = vector.load %arg3[%c0, %c0_0] : memref<128x32xf32, #tpu.memory_space<vmem>>, vector<128x32xf32>
    %c0_1 = arith.constant 0 : index
    %c0_2 = arith.constant 0 : index
    %1 = vector.load %arg4[%c0_1, %c0_2] : memref<21x32xf32, #tpu.memory_space<vmem>>, vector<21x32xf32>
    %2 = tpu.iota {dimensions = array<i32: 1>} : vector<8x128xi32>
    %c0_3 = arith.constant 0 : index
    %c0_4 = arith.constant 0 : index
    %c0_5 = arith.constant 0 : index
    %3 = vector.load %arg2[%c0_3, %c0_4, %c0_5] : memref<1x8x5xf32, #tpu.memory_space<vmem>>, vector<1x8x5xf32>
    %4 = vector.shape_cast %3 : vector<1x8x5xf32> to vector<8x5xf32>
    %5 = arith.fptosi %4 : vector<8x5xf32> to vector<8x5xi32>
    %6 = vector.extract_strided_slice %5 {offsets = [0, 0], sizes = [8, 1], strides = [1, 1]} : vector<8x5xi32> to vector<8x1xi32>
    %c0_i32 = arith.constant 0 : i32
    %7 = vector.broadcast %c0_i32 : i32 to vector<8x1xi32>
    %8 = arith.addi %6, %7 : vector<8x1xi32>
    %9 = vector.broadcast %8 : vector<8x1xi32> to vector<8x128xi32>
    %10 = arith.cmpi eq, %2, %9 : vector<8x128xi32>
    %11 = vector.extract_strided_slice %5 {offsets = [0, 1], sizes = [8, 1], strides = [1, 1]} : vector<8x5xi32> to vector<8x1xi32>
    %c13_i32 = arith.constant 13 : i32
    %12 = vector.broadcast %c13_i32 : i32 to vector<8x1xi32>
    %13 = arith.addi %11, %12 : vector<8x1xi32>
    %14 = vector.broadcast %13 : vector<8x1xi32> to vector<8x128xi32>
    %15 = arith.cmpi eq, %2, %14 : vector<8x128xi32>
    %16 = arith.ori %10, %15 : vector<8x128xi1>
    %17 = vector.extract_strided_slice %5 {offsets = [0, 2], sizes = [8, 1], strides = [1, 1]} : vector<8x5xi32> to vector<8x1xi32>
    %c45_i32 = arith.constant 45 : i32
    %18 = vector.broadcast %c45_i32 : i32 to vector<8x1xi32>
    %19 = arith.addi %17, %18 : vector<8x1xi32>
    %20 = vector.broadcast %19 : vector<8x1xi32> to vector<8x128xi32>
    %21 = arith.cmpi eq, %2, %20 : vector<8x128xi32>
    %22 = arith.ori %16, %21 : vector<8x128xi1>
    %23 = vector.extract_strided_slice %5 {offsets = [0, 3], sizes = [8, 1], strides = [1, 1]} : vector<8x5xi32> to vector<8x1xi32>
    %c52_i32 = arith.constant 52 : i32
    %24 = vector.broadcast %c52_i32 : i32 to vector<8x1xi32>
    %25 = arith.addi %23, %24 : vector<8x1xi32>
    %26 = vector.broadcast %25 : vector<8x1xi32> to vector<8x128xi32>
    %27 = arith.cmpi eq, %2, %26 : vector<8x128xi32>
    %28 = arith.ori %22, %27 : vector<8x128xi1>
    %29 = vector.extract_strided_slice %5 {offsets = [0, 4], sizes = [8, 1], strides = [1, 1]} : vector<8x5xi32> to vector<8x1xi32>
    %c76_i32 = arith.constant 76 : i32
    %30 = vector.broadcast %c76_i32 : i32 to vector<8x1xi32>
    %31 = arith.addi %29, %30 : vector<8x1xi32>
    %32 = vector.broadcast %31 : vector<8x1xi32> to vector<8x128xi32>
    %33 = arith.cmpi eq, %2, %32 : vector<8x128xi32>
    %34 = arith.ori %28, %33 : vector<8x128xi1>
    %35 = arith.extui %34 : vector<8x128xi1> to vector<8x128xi32>
    %36 = arith.sitofp %35 : vector<8x128xi32> to vector<8x128xf32>
    %cst = arith.constant dense<0.000000e+00> : vector<8x32xf32>
    %37 = tpu.matmul %36, %0, %cst {dimension_numbers = #tpu.dot_dimension_numbers<[1], [0], [0], [1], [0, 0, 1, 1], [], []>} : vector<8x128xf32>, vector<128x32xf32>, vector<8x32xf32> -> vector<8x32xf32>
    %c0_6 = arith.constant 0 : index
    %c0_7 = arith.constant 0 : index
    %c0_8 = arith.constant 0 : index
    %38 = vector.load %arg1[%c0_6, %c0_7, %c0_8] : memref<1x8x7xf32, #tpu.memory_space<vmem>>, vector<1x8x7xf32>
    %39 = vector.shape_cast %38 : vector<1x8x7xf32> to vector<8x7xf32>
    %40 = vector.extract_strided_slice %39 {offsets = [7, 0], sizes = [1, 7], strides = [1, 1]} : vector<8x7xf32> to vector<1x7xf32>
    %41 = vector.extract_strided_slice %39 {offsets = [0, 0], sizes = [7, 7], strides = [1, 1]} : vector<8x7xf32> to vector<7x7xf32>
    %42 = tpu.concatenate %40, %41 in 0 : vector<1x7xf32>, vector<7x7xf32> -> vector<8x7xf32>
    %43 = vector.extract_strided_slice %39 {offsets = [1, 0], sizes = [7, 7], strides = [1, 1]} : vector<8x7xf32> to vector<7x7xf32>
    %44 = vector.extract_strided_slice %39 {offsets = [0, 0], sizes = [1, 7], strides = [1, 1]} : vector<8x7xf32> to vector<1x7xf32>
    %45 = tpu.concatenate %43, %44 in 0 : vector<7x7xf32>, vector<1x7xf32> -> vector<8x7xf32>
    %46 = tpu.concatenate %42, %39, %45 in 1 : vector<8x7xf32>, vector<8x7xf32>, vector<8x7xf32> -> vector<8x21xf32>
    %cst_9 = arith.constant dense<0.000000e+00> : vector<8x32xf32>
    %47 = tpu.matmul %46, %1, %cst_9 {dimension_numbers = #tpu.dot_dimension_numbers<[1], [0], [0], [1], [0, 0, 1, 1], [], []>} : vector<8x21xf32>, vector<21x32xf32>, vector<8x32xf32> -> vector<8x32xf32>
    %48 = arith.addf %37, %47 : vector<8x32xf32>
    %c0_10 = arith.constant 0 : index
    %c0_11 = arith.constant 0 : index
    %c0_12 = arith.constant 0 : index
    %49 = vector.load %arg5[%c0_10, %c0_11, %c0_12] : memref<1x8x32xf32, #tpu.memory_space<vmem>>, vector<1x8x32xf32>
    %50 = vector.shape_cast %49 : vector<1x8x32xf32> to vector<8x32xf32>
    %51 = vector.shape_cast %48 : vector<8x32xf32> to vector<1x8x32xf32>
    tpu.vector_store %arg5[%c0_10, %c0_11, %c0_12], %51 {strides = array<i32>} : memref<1x8x32xf32, #tpu.memory_space<vmem>>, vector<1x8x32xf32>,
    return
  }
  func.func @transform_0(%arg0: i32) -> (i32, i32, i32) {
    %c0_i32 = arith.constant 0 : i32
    %c0_i32_0 = arith.constant 0 : i32
    %c0_i32_1 = arith.constant 0 : i32
    return %arg0, %c0_i32, %c0_i32_0 : i32, i32, i32
  }
  func.func @transform_1(%arg0: i32) -> (i32, i32, i32) {
    %c0_i32 = arith.constant 0 : i32
    %c0_i32_0 = arith.constant 0 : i32
    %c0_i32_1 = arith.constant 0 : i32
    return %arg0, %c0_i32, %c0_i32_0 : i32, i32, i32
  }
  func.func @transform_2(%arg0: i32) -> (i32, i32) {
    %c0_i32 = arith.constant 0 : i32
    %c0_i32_0 = arith.constant 0 : i32
    %c0_i32_1 = arith.constant 0 : i32
    return %c0_i32, %c0_i32_0 : i32, i32
  }
  func.func @transform_3(%arg0: i32) -> (i32, i32) {
    %c0_i32 = arith.constant 0 : i32
    %c0_i32_0 = arith.constant 0 : i32
    %c0_i32_1 = arith.constant 0 : i32
    return %c0_i32, %c0_i32_0 : i32, i32
  }
  func.func @transform_4(%arg0: i32) -> (i32, i32, i32) {
    %c0_i32 = arith.constant 0 : i32
    %c0_i32_0 = arith.constant 0 : i32
    %c0_i32_1 = arith.constant 0 : i32
    return %arg0, %c0_i32, %c0_i32_0 : i32, i32, i32
  }
}

</mosaic_0001>

<bundles_post_ra>
// kernel: data_embedding_wo_pos.1
= control target key start
LH: loop header
LB: loop body
LE: loop exit
PB: predicated region body
PF: predicated region fallthrough
CT: control target
= control target key end

     0   :  { %9 = vsyncpa [#allocation3], 0  ;;  %s781_s0 = inlined_call_operand.vmem [shape: f32[2,8,7], index: 0, kind: input, shape index: {}]   ;;  %s782_s1 = inlined_call_operand.vmem [shape: f32[2,8,5], index: 1, kind: input, shape index: {}]   ;;  %s783_s2 = inlined_call_operand.hbm [shape: f32[128,32], index: 2, kind: input, shape index: {}]   ;;  %s784_s3 = inlined_call_operand.vmem [shape: f32[21,32], index: 3, kind: input, shape index: {}]   ;;  %s785_s4 = inlined_call_operand.hbm [shape: f32[2,8,32], index: 4, kind: output, shape index: {}]  }
   0x1   :  { %10 = vsyncpa [#allocation4], 0 }
   0x2   :  { %12 = vsyncpa [#allocation4 + $0x1], 0  ;;  %s671_s15 = smov 0   ;;  %s673_s16 = smov 0  }
   0x3   :  { %s675_s17 = smov 0   ;;  %s677_s18 = smov 0  }
   0x4 LB: > { %s692_s19 = sadd.s32 4294967295, %s633_s18   ;;  %s450_s20 = sadd.s32 4294967294, %s633_s18   ;;  %s633_s18 = sphi %s677_s18, %s791_s18   ;;  %s629_s17 = sphi %s675_s17, %s790_s17   ;;  %s625_s16 = sphi %s673_s16, %s789_s16   ;;  %s621_s15 = sphi %s671_s15, %s788_s15  }
   0x5   : > { %s696_s21 = sadd.s32 1, %s633_s18   ;;  %s119_s22 = sadd.s32 1, %s629_s17 }
   0x6   : > { %s116_s23 = ssub.s32 %s633_s18, %s696_s21  ;;  %p129_p0 = scmp.ne.s32.totalorder %s629_s17, %s625_s16 }
   0x7   : > { %p117_p1 = scmp.eq.s32.totalorder %s116_s23, 0  ;;  %p130_p2 = scmp.eq.s32.totalorder %s692_s19, 1 }
   0x8   : > { %p135_p3 = scmp.ne.s32.totalorder %s625_s16, %s621_s15  ;;  %p136_p4 = scmp.eq.s32.totalorder %s450_s20, 1 }
   0x9   : > { %s707_s24 = scalar_select %p117_p1, %s629_s17, %s119_s22  }
   0xa   : > { %p709_p5 = por %p130_p2, %p129_p0  ;;  %p713_p6 = por %p136_p4, %p135_p3 }
   0xb   : > { %p451_p7 = scmp.ge.s32.totalorder %s633_s18, 1  ;;  %p143_p8 = scmp.lt.s32.totalorder %s633_s18, 3 }
   0xc   : > { %p485_p9 = scmp.eq.s32.totalorder %s692_s19, 0  ;;  %s154_s29 = sshll.u32 %s783_s2, 4  ;;  %s155_s29 = int_to_ptr.hbm [resolvable:$true] %s154_s29 }
   0xd   : > { %p144_p10 = pnand %p451_p7, %p143_p8  ;;  %s635_s30 = smov [#allocation2]  }
   0xe   : > { %s156_s5 = sshll.u32 %s635_s30, 4  ;;  %s636_s6 = smov 128   ;;  %s157_s5 = int_to_ptr.vmem [resolvable:$true] %s156_s5 }
   0xf   : > { %p477_p11 = pneg %p144_p10  ;;  %s637_s7 = smov 8  }
  0x10   : > { %189 = sbr.rel (%p144_p10) target bundleno = 300 (0x12c), region = 36 }
  0x11   : > { %p478_p12 = pnand %p485_p9, %p477_p11 }
  0x13   : > { %480 = dma.hbm_to_vmem [thread:$0]  (!%p478_p12), %s155_s29, 2048, %s157_s5, [#allocation3], %s636_s6, %s636_s6, %s637_s7  }
  0x15   : > { %612 = dma.done.wait (%p485_p9), [#allocation3], 2048  }
  0x16   : > { %614 = vsyncadd (%p485_p9), [#allocation3], 4294965248  ;;  %p219_p13 = scmp.lt.s32.totalorder %s692_s19, 1  ;;  %v638_v0 = vmov 0   ;;  %v639_v1 = vmov 2   ;;  %v640_v2 = vmov 4   ;;  %v246_v37 = vlaneseq }
  0x17   : > { %531 = vset.pattern.permute.xlu0 %v638_v0  ;;  %533 = vset.pattern.permute.xlu1 %v639_v1  ;;  %v242_v4 = vld [vmem:[#allocation2 + $0x78] sm:$0xff]  ;;  %v241_v7 = vld [vmem:[#allocation2 + $0x70] sm:$0xff]  ;;  %v240_v8 = vld [vmem:[#allocation2 + $0x68] sm:$0xff]  ;;  %v641_v20 = vmov 1   ;;  %v642_v22 = vmov 3   ;;  %s643_s22 = smov 7  }
  0x18   : > { %s731_s8 = scalar_select %p219_p13, %s692_s19, 1  ;;  %535 = vset.pattern.permute.xlu2 %v640_v2  ;;  %329 = vmatpush.msra.mxu1 %v242_v4  ;;  %v239_v11 = vld [vmem:[#allocation2 + $0x60] sm:$0xff]  ;;  %v238_v14 = vld [vmem:[#allocation2 + $0x58] sm:$0xff]  ;;  %v237_v15 = vld [vmem:[#allocation2 + $0x50] sm:$0xff]  ;;  %vm305_vm1 = vcmask 1044480   ;;  %v247_v39 = vand.u32 127, %v246_v37 }
  0x19   : > { %v236_v16 = vld [vmem:[#allocation2 + $0x48] sm:$0xff]  ;;  %v235_v18 = vld [vmem:[#allocation2 + $0x40] sm:$0xff]  ;;  %s644_s23 = smov 14   ;;  %v234_v24 = vld [vmem:[#allocation2 + $0x38] sm:$0xff]  ;;  %vm297_vm11 = vcmask 56320   ;;  %v645_v44 = vmov 0.0  }
  0x1a   : > { %s457_s9 = sshll.u32 %s731_s8, 3  ;;  %330 = vmatpush.msra.mxu1 %v241_v7  ;;  %v233_v25 = vld [vmem:[#allocation2 + $0x30] sm:$0xff]  ;;  %v232_v26 = vld [vmem:[#allocation2 + $0x28] sm:$0xff]  ;;  %v231_v27 = vld [vmem:[#allocation2 + $0x20] sm:$0xff]  ;;  %vm299_vm12 = vcmask 113664   ;;  %vm301_vm13 = vcmask 171008  }
  0x1b   : > { %s226_s12 = scalar_lea.vmem %s782_s1, %s457_s9  ;;  %s222_s20 = scalar_lea.vmem %s781_s0, %s457_s9  ;;  %v230_v28 = vld [vmem:[#allocation2 + $0x18] sm:$0xff]  ;;  %v229_v29 = vld [vmem:[#allocation2 + $0x10] sm:$0xff]  ;;  %v228_v30 = vld [vmem:[#allocation2 + $0x8] sm:$0xff]  ;;  %vm349_vm14 = vcmask 261120  }
  0x1c   : > { %v248_v3 = vld [vmem:[%s226_s12] sm:$0xff]  ;;  %331 = vmatpush.msra.mxu1 %v240_v8  ;;  %v245_v32 = vld [vmem:[%s784_s3 + $0x10] sm:$0x1f]  ;;  %v244_v33 = vld [vmem:[%s784_s3 + $0x8] sm:$0xff]  ;;  %s216_s7 = sand.u32 1, %s625_s16   ;;  %s463_s9 = sshll.u32 %s692_s19, 3 }
  0x1d   : > { %vm466_vm0 = vcmp.lt.s32.totalorder %v248_v3, 0  ;;  %v467_v5 = vceil.f32 %v248_v3  ;;  %v468_v6 = vfloor.f32 %v248_v3  ;;  %v280_v21 = vld [vmem:[%s222_s20] sm:$0xff]  ;;  %460 = vmatpush.msk.msra.mxu0 %vm305_vm1, %v245_v32  ;;  %s456_s8 = sshll.u32 %s216_s7, 3  ;;  %s362_s12 = scalar_lea.hbm %s785_s4, %s463_s9 }
  0x1e   : > { %332 = vmatpush.msra.mxu1 %v239_v11  ;;  %v286_v23 = vrot.slane %v280_v21, 1  ;;  %v227_v31 = vld [vmem:[#allocation2] sm:$0xff]  ;;  %v282_v42 = vrot.slane %v280_v21, 7  ;;  %s218_s13 = scalar_lea.vmem [#allocation5], %s456_s8  ;;  %s366_s20 = sshll.u32 %s362_s12, 4  ;;  %s367_s20 = int_to_ptr.hbm [resolvable:$true] %s366_s20 }
  0x1f   : > { %v469_v9 = vsel %vm466_vm0, %v467_v5, %v468_v6  ;;  %323 = vmatpush.msra.mxu0 %v244_v33  ;;  %v243_v34 = vld [vmem:[%s784_s3] sm:$0xff]  ;;  %s364_s14 = sshll.u32 %s218_s13, 4  ;;  %s587_s29 = scalar_lea.hbm %s785_s4, 16  ;;  %s365_s14 = int_to_ptr.vmem [resolvable:$true] %s364_s14 }
  0x20   : > { %v470_v10 = vcvt.f32.s32 %v469_v9  ;;  %333 = vmatpush.msra.mxu1 %v238_v14 }
  0x21   : > { %324 = vmatpush.msra.mxu0 %v243_v34 }
  0x22   : > { %251 = vperm.xlu0 %531, %v470_v10   ;;  %v260_v12 = vadd.s32 45, %v470_v10  ;;  %v272_v13 = vadd.s32 76, %v470_v10  ;;  %v254_v17 = vadd.s32 13, %v470_v10  ;;  %334 = vmatpush.msra.mxu1 %v237_v15  ;;  %v266_v19 = vadd.s32 52, %v470_v10 }
  0x24   : > { %262 = vperm.xlu1 %533, %v260_v12   ;;  %274 = vperm.xlu2 %535, %v272_v13  }
  0x25   : > { %335 = vmatpush.msra.mxu1 %v236_v16 }
  0x27   : > { %336 = vmatpush.msra.mxu1 %v235_v18 }
  0x29   : > { %337 = vmatpush.msra.mxu1 %v234_v24 }
  0x2a   : > { %532 = vset.pattern.permute.xlu0 %v641_v20 }
  0x2b   : > { %256 = vperm.xlu0 %532, %v254_v17   ;;  %338 = vmatpush.msra.mxu1 %v233_v25 }
  0x2c   : > { %534 = vset.pattern.permute.xlu1 %v642_v22  ;;  %290 = vrot.lane.b32.xlu2 %v280_v21, %s643_s22  ;;  %s352_s22 = scalar_lea.sflag [#allocation4], %s216_s7 }
  0x2d   : > { %268 = vperm.xlu1 %534, %v266_v19   ;;  %339 = vmatpush.msra.mxu1 %v232_v26 }
  0x2f   : > { %340 = vmatpush.msra.mxu1 %v231_v27 }
  0x31   : > { %341 = vmatpush.msra.mxu1 %v230_v28 }
  0x33   : > { %536 = vset.pattern.permute.xlu0 %v640_v2  ;;  %342 = vmatpush.msra.mxu1 %v229_v29 }
  0x35   : > { %294 = vrot.lane.b32.xlu1 %v286_v23, %s644_s23  ;;  %343 = vmatpush.msra.mxu1 %v228_v30  ;;  %s581_s23 = sshra.s32 %s367_s20, 4  ;;  %s582_s23 = int_to_ptr.hbm [resolvable:$true] %s581_s23 }
  0x36   : > { %s583_s27 = scalar_lea.hbm %s582_s23, 8  ;;  %p588_p3 = scmp.lt.s32.totalorder %s582_s23, %s785_s4 }
  0x37   : > { %344 = vmatpush.msra.mxu1 %v227_v31  ;;  %p584_p0 = scmp.ne.s32.totalorder %s582_s23, %s583_s27  ;;  %p589_p4 = scmp.lt.s32.totalorder %s587_s29, %s583_s27 }
  0x39   : > { %p585_p1 = pnand %p584_p0, %p709_p5  ;;  %p590_p7 = por %p589_p4, %p588_p3 }
  0x3b   : > { %p586_p2 = pneg %p585_p1 }
  0x3d   : > { %p591_p8 = pnand %p590_p7, %p586_p2 }
  0x7e   : > { %v275_v38 = vpop.permute.xlu2 %274 }
  0x7f   : > { %vm276_vm8 = vcmp.eq.s32.totalorder %v247_v39, %v275_v38 }
  0x86   : > { %v291_v43 = vpop.permute.xlu2 %290 }
  0x87   : > { %v298_v46 = vsel %vm297_vm11, %v282_v42, %v291_v43 }
  0x94   : > { %v252_v35 = vpop.permute.xlu0 %251 }
  0x95   : > { %vm253_vm2 = vcmp.eq.s32.totalorder %v247_v39, %v252_v35 }
  0x96   : > { %v263_v36 = vpop.permute.xlu1 %262 }
  0x97   : > { %vm264_vm4 = vcmp.eq.s32.totalorder %v247_v39, %v263_v36 }
  0x9d   : > { %v257_v40 = vpop.permute.xlu0 %256 }
  0x9e   : > { %vm258_vm3 = vcmp.eq.s32.totalorder %v247_v39, %v257_v40 }
  0x9f   : > { %vm259_vm5 = vmor %vm253_vm2, %vm258_vm3  ;;  %v269_v41 = vpop.permute.xlu1 %268 }
  0xa0   : > { %vm265_vm6 = vmor %vm259_vm5, %vm264_vm4  ;;  %vm270_vm7 = vcmp.eq.s32.totalorder %v247_v39, %v269_v41 }
  0xa1   : > { %vm271_vm9 = vmor %vm265_vm6, %vm270_vm7 }
  0xa2   : > { %vm277_vm10 = vmor %vm271_vm9, %vm276_vm8 }
  0xa3   : > { %v459_v45 = vsel %vm277_vm10, 1.0, %v645_v44 }
  0xa4   : > { %345 = vmatmul.f32.vlgmr.msra.gmra.mxu1 %v459_v45 }
  0xa7   : > { %v295_v47 = vpop.permute.xlu1 %294 }
  0xa8   : > { %v300_v48 = vsel %vm299_vm12, %v298_v46, %v295_v47 }
  0xa9   : > { %461 = vmatmul.msk.f32.vlgmr.msra.gmra.mxu0 %vm301_vm13, %v300_v48 }
 0x121   : > { %v346_v49 = vpop.f32.mrf.mxu1 }
 0x126   : > { %v326_v50 = vpop.f32.mrf.mxu0 }
 0x127   : > { %v347_v51 = vadd.f32 %v346_v49, %v326_v50 }
 0x129   : > { %350 = vst.msk [vmem:[%s218_s13] sm:$0xff] %vm349_vm14, %v347_v51 }
 0x12a   : > { %594 = shalt.err (!%p591_p8)
}
 0x12b   : > { %475 = dma.vmem_to_hbm [thread:$0]  (%p709_p5), %s365_s14, 128, %s367_s20, %s352_s22  }
 0x12c PF: > { %p487_p9 = scmp.ge.s32.totalorder %s633_s18, 2  ;;  %s378_s6 = sand.u32 1, %s621_s15  }
 0x12d   : > { %s379_s7 = scalar_lea.sflag [#allocation4], %s378_s6 }
 0x12e   : > { %p482_p10 = pnand %p487_p9, %p713_p6 }
 0x130   : > { %p483_p11 = pneg %p482_p10 }
 0x132   : > { %616 = dma.done.wait (%p483_p11), %s379_s7, 128  }
 0x133   : > { %618 = vsyncadd (%p483_p11), %s379_s7, 4294967168  ;;  %p15_p12 = scmp.ge.s32.totalorder %s696_s21, 4   ;;  %s788_s15 = smov %s625_s16 }
 0x134   : > { %s789_s16 = smov %s629_s17  ;;  %s790_s17 = smov %s707_s24 }
 0x135   : > { %s791_s18 = smov %s696_s21  ;;  %17 = sbr.rel (!%p15_p12) target bundleno = 4 (0x4), region = 79 }
 0x13a   :  { %385 = vsyncpa [#allocation3], 1 }
 0x13b   :  { %387 = vsyncpa [#allocation3 + $0x1], 1 }
 0x13c   :  { %388 = vsyncpa [#allocation4], 1 }
 0x13d   :  { %390 = vsyncpa [#allocation4 + $0x1], 1 }

</bundles_post_ra>
